<compile_context>
chip_gen: v5e
topology: v5e:2x2
jax: 0.10.0
libtpu: 0.0.40
codegen_flags: <defaults>
</compile_context>

<pallas_src>
import functools

import jax
import jax.numpy as jnp
from jax import lax
from jax.experimental import pallas as pl
from jax.experimental.pallas import tpu as pltpu

_R_TARGET = 1024   # sublane rows of 128 lanes per grid tile (~1.5 MiB / input block)
_CH = 8            # sublane rows per inner chunk -> every chunk array is one vreg


def _cdiv(a, b):
    return -(-a // b)


def _round_up(x, m):
    return _cdiv(x, m) * m


def _loss_kernel(pred_ref, label_ref, out_ref, acc_ref, *,
                 dhw, r, nt_half, has_weight, w0, w1, w2,
                 mask_anywhere, n_chunks, unroll):
    h = pl.program_id(1)           # which half of the per-sample voxel range
    i = pl.program_id(2)           # tile index inside the half (reduction axis)
    g = h * nt_half + i            # intended row-block index (may overrun)

    num_acc = 9 if has_weight else 7

    def tile_partials(masked):
        """(num_acc) running (_CH, 128) partial sums for the current tile."""

        def body(j, carry):
            base = pl.multiple_of(j * _CH, _CH)
            rows = pl.ds(base, _CH)
            c0 = pred_ref[0, 0, rows, :].astype(jnp.float32)
            c1 = pred_ref[0, 1, rows, :].astype(jnp.float32)
            c2 = pred_ref[0, 2, rows, :].astype(jnp.float32)
            l0 = label_ref[0, 0, rows, :].astype(jnp.float32)
            l1 = label_ref[0, 1, rows, :].astype(jnp.float32)
            l2 = label_ref[0, 2, rows, :].astype(jnp.float32)

            # softmax over the 3 channels (VPU max/sub + EUP exp/recip)
            mx = jnp.maximum(jnp.maximum(c0, c1), c2)
            e0 = jnp.exp(c0 - mx)
            e1 = jnp.exp(c1 - mx)
            e2 = jnp.exp(c2 - mx)
            den = e0 + e1 + e2
            inv = pl.reciprocal(den, approx=True)
            inv = inv * (2.0 - den * inv)        # one Newton step -> ~f32 exact
            p0 = e0 * inv
            p1 = e1 * inv
            p2 = e2 * inv

            # nn.CrossEntropyLoss re-applies log-softmax to the probabilities;
            # p in [0, 1] so no max shift is required.
            lse2 = jnp.log(jnp.exp(p0) + jnp.exp(p1) + jnp.exp(p2))
            y0 = jnp.logical_and(l0 >= l1, l0 >= l2)      # argmax(label, ch)
            y1 = jnp.logical_and(jnp.logical_not(y0), l1 >= l2)
            p_sel = jnp.where(y0, p0, jnp.where(y1, p1, p2))
            nll = lse2 - p_sel
            if has_weight:
                w_sel = jnp.where(y0, w0, jnp.where(y1, w1, w2))

            if masked:
                # Only boundary tiles take this path; mask the primitive
                # quantities (where-select, so garbage/NaN never propagates).
                row_io = lax.broadcasted_iota(jnp.int32, (_CH, 128), 0)
                lane_io = lax.broadcasted_iota(jnp.int32, (_CH, 128), 1)
                vox = (g * r + base + row_io) * 128 + lane_io
                valid = vox < dhw
                p1 = jnp.where(valid, p1, 0.0)
                p2 = jnp.where(valid, p2, 0.0)
                l1 = jnp.where(valid, l1, 0.0)
                l2 = jnp.where(valid, l2, 0.0)
                nll = jnp.where(valid, nll, 0.0)
                if has_weight:
                    w_sel = jnp.where(valid, w_sel, 0.0)

            terms = [p1 * l1, l1, p1,            # dice(helix) partials
                     p2 * l2, l2, p2,            # dice(sheet) partials
                     nll]                        # CE numerator
            if has_weight:
                terms += [nll * w_sel, w_sel]    # weighted-CE num / den
            return tuple(a + t for a, t in zip(carry, terms))

        init = tuple(jnp.zeros((_CH, 128), jnp.float32) for _ in range(num_acc))
        return lax.fori_loop(0, n_chunks, body, init, unroll=unroll)

    def accumulate(parts):
        @pl.when(i == 0)                         # first tile: write, no zero-init
        def _():
            for k in range(num_acc):
                acc_ref[k] = parts[k]

        @pl.when(i != 0)
        def _():
            for k in range(num_acc):
                acc_ref[k] = acc_ref[k] + parts[k]

    if mask_anywhere:
        needs_mask = (g + 1) * (r * 128) > dhw   # cheap scalar predicate

        @pl.when(needs_mask)
        def _():
            accumulate(tile_partials(True))

        @pl.when(jnp.logical_not(needs_mask))
        def _():
            accumulate(tile_partials(False))
    else:
        accumulate(tile_partials(False))

    @pl.when(i == nt_half - 1)
    def _():
        # One cross-sublane reduction per (sample, half); lanes reduced in glue.
        out_ref[...] = jnp.sum(acc_ref[...], axis=1)[None, None]


def loss_func(pred, label, weight=None, r_target=_R_TARGET):
    """pred, label: (N, 3, D, H, W). Returns the scalar total loss."""
    n, c, d, h, w = pred.shape
    assert c == 3, "LossFunc expects 3 channels"
    dhw = d * h * w
    m = n * dhw

    # Native layout: (N, 3, DHW) -> (N, 3, S, 128) rows of 128 lanes.
    dhw_pad = _round_up(dhw, _CH * 128)
    pred_r = pred.reshape(n, 3, dhw)
    label_r = label.reshape(n, 3, dhw)
    if dhw_pad != dhw:
        # TODO(synk): for large ragged volumes this pad is an extra HBM pass of
        # both inputs; prefer producing 1024-aligned DHW upstream.
        pad = dhw_pad - dhw
        pred_r = jnp.pad(pred_r, ((0, 0), (0, 0), (0, pad)))
        label_r = jnp.pad(label_r, ((0, 0), (0, 0), (0, pad)))
    s = dhw_pad // 128
    pred_r = pred_r.reshape(n, 3, s, 128)
    label_r = label_r.reshape(n, 3, s, 128)

    # Balanced tile size: nb blocks of r sublane rows (multiple of 8, <= s).
    nb = _cdiv(s, r_target)
    r = _round_up(_cdiv(s, nb), _CH)
    nt = _cdiv(s, r)

    # 2-way split of the per-sample reduction so both TensorCores (v7x) have
    # work even when N == 1; harmless (one extra output row) on v5e/v6e.
    n_split = 2 if nt >= 2 else 1
    nt_half = _cdiv(nt, n_split)

    has_weight = weight is not None
    if has_weight:
        w0, w1, w2 = (float(x) for x in weight)
    else:
        w0 = w1 = w2 = 1.0          # unused in the specialized 7-sum path
    num_acc = 9 if has_weight else 7

    mask_anywhere = (n_split * nt_half * r * 128) > dhw
    n_chunks = r // _CH
    unroll = min(4, n_chunks)

    if n_split * nt_half > nt:
        # Odd nt: the phantom last tile re-reads a valid block; its data is
        # fully masked inside the kernel (its intended voxels are >= dhw).
        def in_map(b, hh, i):
            return (b, 0, jnp.minimum(hh * nt_half + i, nt - 1), 0)
    else:
        def in_map(b, hh, i):
            return (b, 0, hh * nt_half + i, 0)

    kernel = functools.partial(
        _loss_kernel, dhw=dhw, r=r, nt_half=nt_half, has_weight=has_weight,
        w0=w0, w1=w1, w2=w2, mask_anywhere=mask_anywhere,
        n_chunks=n_chunks, unroll=unroll)

    out = pl.pallas_call(
        kernel,
        out_shape=jax.ShapeDtypeStruct((n, n_split, num_acc, 128), jnp.float32),
        grid_spec=pltpu.PrefetchScalarGridSpec(
            num_scalar_prefetch=0,
            grid=(n, n_split, nt_half),
            in_specs=[
                pl.BlockSpec((1, 3, r, 128), in_map),
                pl.BlockSpec((1, 3, r, 128), in_map),
            ],
            out_specs=pl.BlockSpec((1, 1, num_acc, 128),
                                   lambda b, hh, i: (b, hh, 0, 0)),
            scratch_shapes=[pltpu.VMEM((num_acc, _CH, 128), jnp.float32)],
        ),
        compiler_params=pltpu.CompilerParams(
            dimension_semantics=("parallel", "parallel", "arbitrary")),
    )(pred_r, label_r)

    # Tiny glue: reduce per-(sample, half), per-lane partial sums to scalars.
    sums = jnp.sum(out, axis=(0, 1, 3))
    eps = 1.0
    s_pl1, s_l1, s_p1 = sums[0], sums[1], sums[2]
    s_pl2, s_l2, s_p2 = sums[3], sums[4], sums[5]
    ce_sum = sums[6]
    dice_helix = 1.0 - (2.0 * s_pl1 + eps) / (s_l1 + s_p1 + eps)
    dice_sheet = 1.0 - (2.0 * s_pl2 + eps) / (s_l2 + s_p2 + eps)
    cross_entropy = ce_sum / m
    if has_weight:
        weighted_cross_entropy = sums[7] / sums[8]
    else:
        weighted_cross_entropy = cross_entropy   # weight=None: wCE == CE
    return (0.7 * cross_entropy + 0.3 * weighted_cross_entropy
            + 0.3 * dice_helix + 0.3 * dice_sheet)


if __name__ == "__main__":
    key = jax.random.PRNGKey(0)
    k_pred, k_cls = jax.random.split(key)

    # Small shape consistent with the module: (N, 3, D, H, W).
    N, C, D, H, W = 2, 3, 8, 8, 8
    pred = jax.random.normal(k_pred, (N, C, D, H, W), dtype=jnp.float32)
    cls = jax.random.randint(k_cls, (N, D, H, W), 0, C)
    label = jax.nn.one_hot(cls, C, axis=1, dtype=jnp.float32)   # (N, 3, D, H, W)

    total = jax.jit(loss_func)(pred, label)
    jax.block_until_ready(total)
    print("KERNEL_OK")
</pallas_src>

<mosaic_0001>
module attributes {stable_mosaic.version = 11 : i64} {
  func.func @_loss_kernel(%arg0: i32, %arg1: i32, %arg2: i32, %arg3: memref<1x3x8x128xf32, #tpu.memory_space<vmem>>, %arg4: memref<1x3x8x128xf32, #tpu.memory_space<vmem>>, %arg5: memref<1x1x7x128xf32, #tpu.memory_space<vmem>>, %arg6: memref<7x8x128xf32, #tpu.memory_space<vmem>>) attributes {dimension_semantics = [#tpu.dimension_semantics<parallel>, #tpu.dimension_semantics<parallel>, #tpu.dimension_semantics<arbitrary>], iteration_bounds = array<i64: 2, 1, 1>, scalar_prefetch = 0 : i64, scratch_operands = 1 : i64, tpu.core_type = #tpu.core_type<tc>, window_params = [{transform_indices = @transform_0, window_bounds = array<i64: 1, 3, 8, 128>}, {transform_indices = @transform_1, window_bounds = array<i64: 1, 3, 8, 128>}, {transform_indices = @transform_2, window_bounds = array<i64: 1, 1, 7, 128>}]} {
    %c1_i32 = arith.constant 1 : i32
    %0 = arith.muli %arg1, %c1_i32 : i32
    %1 = arith.addi %0, %arg2 : i32
    %c1_i32_0 = arith.constant 1 : i32
    %2 = arith.addi %1, %c1_i32_0 : i32
    %c1024_i32 = arith.constant 1024 : i32
    %3 = arith.muli %2, %c1024_i32 : i32
    %c512_i32 = arith.constant 512 : i32
    %4 = arith.cmpi sgt, %3, %c512_i32 : i32
    %5 = arith.extui %4 : i1 to i32
    %c0_i32 = arith.constant 0 : i32
    %6 = arith.cmpi ne, %5, %c0_i32 : i32
    scf.if %6 {
      %cst = arith.constant 0.000000e+00 : f32
      %13 = vector.broadcast %cst : f32 to vector<8x128xf32>
      %cst_4 = arith.constant 0.000000e+00 : f32
      %14 = vector.broadcast %cst_4 : f32 to vector<8x128xf32>
      %cst_5 = arith.constant 0.000000e+00 : f32
      %15 = vector.broadcast %cst_5 : f32 to vector<8x128xf32>
      %cst_6 = arith.constant 0.000000e+00 : f32
      %16 = vector.broadcast %cst_6 : f32 to vector<8x128xf32>
      %cst_7 = arith.constant 0.000000e+00 : f32
      %17 = vector.broadcast %cst_7 : f32 to vector<8x128xf32>
      %cst_8 = arith.constant 0.000000e+00 : f32
      %18 = vector.broadcast %cst_8 : f32 to vector<8x128xf32>
      %cst_9 = arith.constant 0.000000e+00 : f32
      %19 = vector.broadcast %cst_9 : f32 to vector<8x128xf32>
      %c0_i32_10 = arith.constant 0 : i32
      %c8_i32 = arith.constant 8 : i32
      %20 = arith.muli %c0_i32_10, %c8_i32 : i32
      %21 = tpu.assume_multiple %20, 8 : i32
      %c0 = arith.constant 0 : index
      %c0_11 = arith.constant 0 : index
      %22 = arith.index_cast %21 : i32 to index
      %c0_12 = arith.constant 0 : index
      %23 = vector.load %arg3[%c0, %c0_11, %22, %c0_12] : memref<1x3x8x128xf32, #tpu.memory_space<vmem>>, vector<1x1x8x128xf32>
      %24 = vector.shape_cast %23 : vector<1x1x8x128xf32> to vector<8x128xf32>
      %c0_13 = arith.constant 0 : index
      %c1 = arith.constant 1 : index
      %25 = arith.index_cast %21 : i32 to index
      %c0_14 = arith.constant 0 : index
      %26 = vector.load %arg3[%c0_13, %c1, %25, %c0_14] : memref<1x3x8x128xf32, #tpu.memory_space<vmem>>, vector<1x1x8x128xf32>
      %27 = vector.shape_cast %26 : vector<1x1x8x128xf32> to vector<8x128xf32>
      %c0_15 = arith.constant 0 : index
      %c2 = arith.constant 2 : index
      %28 = arith.index_cast %21 : i32 to index
      %c0_16 = arith.constant 0 : index
      %29 = vector.load %arg3[%c0_15, %c2, %28, %c0_16] : memref<1x3x8x128xf32, #tpu.memory_space<vmem>>, vector<1x1x8x128xf32>
      %30 = vector.shape_cast %29 : vector<1x1x8x128xf32> to vector<8x128xf32>
      %c0_17 = arith.constant 0 : index
      %c0_18 = arith.constant 0 : index
      %31 = arith.index_cast %21 : i32 to index
      %c0_19 = arith.constant 0 : index
      %32 = vector.load %arg4[%c0_17, %c0_18, %31, %c0_19] : memref<1x3x8x128xf32, #tpu.memory_space<vmem>>, vector<1x1x8x128xf32>
      %33 = vector.shape_cast %32 : vector<1x1x8x128xf32> to vector<8x128xf32>
      %c0_20 = arith.constant 0 : index
      %c1_21 = arith.constant 1 : index
      %34 = arith.index_cast %21 : i32 to index
      %c0_22 = arith.constant 0 : index
      %35 = vector.load %arg4[%c0_20, %c1_21, %34, %c0_22] : memref<1x3x8x128xf32, #tpu.memory_space<vmem>>, vector<1x1x8x128xf32>
      %36 = vector.shape_cast %35 : vector<1x1x8x128xf32> to vector<8x128xf32>
      %c0_23 = arith.constant 0 : index
      %c2_24 = arith.constant 2 : index
      %37 = arith.index_cast %21 : i32 to index
      %c0_25 = arith.constant 0 : index
      %38 = vector.load %arg4[%c0_23, %c2_24, %37, %c0_25] : memref<1x3x8x128xf32, #tpu.memory_space<vmem>>, vector<1x1x8x128xf32>
      %39 = vector.shape_cast %38 : vector<1x1x8x128xf32> to vector<8x128xf32>
      %40 = arith.maximumf %24, %27 : vector<8x128xf32>
      %41 = arith.maximumf %40, %30 : vector<8x128xf32>
      %42 = arith.subf %24, %41 : vector<8x128xf32>
      %43 = math.exp %42 : vector<8x128xf32>
      %44 = arith.subf %27, %41 : vector<8x128xf32>
      %45 = math.exp %44 : vector<8x128xf32>
      %46 = arith.subf %30, %41 : vector<8x128xf32>
      %47 = math.exp %46 : vector<8x128xf32>
      %48 = arith.addf %43, %45 : vector<8x128xf32>
      %49 = arith.addf %48, %47 : vector<8x128xf32>
      %50 = tpu.reciprocal %49 {approx = true} : vector<8x128xf32> -> vector<8x128xf32>
      %51 = arith.mulf %49, %50 : vector<8x128xf32>
      %cst_26 = arith.constant 2.000000e+00 : f32
      %52 = vector.broadcast %cst_26 : f32 to vector<8x128xf32>
      %53 = arith.subf %52, %51 : vector<8x128xf32>
      %54 = arith.mulf %50, %53 : vector<8x128xf32>
      %55 = arith.mulf %43, %54 : vector<8x128xf32>
      %56 = arith.mulf %45, %54 : vector<8x128xf32>
      %57 = arith.mulf %47, %54 : vector<8x128xf32>
      %58 = math.exp %55 : vector<8x128xf32>
      %59 = math.exp %56 : vector<8x128xf32>
      %60 = arith.addf %58, %59 : vector<8x128xf32>
      %61 = math.exp %57 : vector<8x128xf32>
      %62 = arith.addf %60, %61 : vector<8x128xf32>
      %63 = math.log %62 : vector<8x128xf32>
      %64 = arith.cmpf oge, %33, %36 : vector<8x128xf32>
      %65 = arith.cmpf oge, %33, %39 : vector<8x128xf32>
      %66 = arith.andi %64, %65 : vector<8x128xi1>
      %cst_27 = arith.constant dense<true> : vector<8x128xi1>
      %67 = arith.xori %66, %cst_27 : vector<8x128xi1>
      %68 = arith.cmpf oge, %36, %39 : vector<8x128xf32>
      %69 = arith.andi %67, %68 : vector<8x128xi1>
      %70 = arith.select %69, %56, %57 : vector<8x128xi1>, vector<8x128xf32>
      %71 = arith.select %66, %55, %70 : vector<8x128xi1>, vector<8x128xf32>
      %72 = arith.subf %63, %71 : vector<8x128xf32>
      %73 = tpu.iota {dimensions = array<i32: 0>} : vector<8x128xi32>
      %74 = tpu.iota {dimensions = array<i32: 1>} : vector<8x128xi32>
      %c8_i32_28 = arith.constant 8 : i32
      %75 = arith.muli %1, %c8_i32_28 : i32
      %76 = arith.addi %75, %21 : i32
      %77 = vector.broadcast %76 : i32 to vector<8x128xi32>
      %78 = arith.addi %77, %73 : vector<8x128xi32>
      %c128_i32 = arith.constant 128 : i32
      %79 = vector.broadcast %c128_i32 : i32 to vector<8x128xi32>
      %80 = arith.muli %78, %79 : vector<8x128xi32>
      %81 = arith.addi %80, %74 : vector<8x128xi32>
      %c512_i32_29 = arith.constant 512 : i32
      %82 = vector.broadcast %c512_i32_29 : i32 to vector<8x128xi32>
      %83 = arith.cmpi slt, %81, %82 : vector<8x128xi32>
      %cst_30 = arith.constant 0.000000e+00 : f32
      %84 = vector.broadcast %cst_30 : f32 to vector<8x128xf32>
      %85 = arith.select %83, %56, %84 : vector<8x128xi1>, vector<8x128xf32>
      %cst_31 = arith.constant 0.000000e+00 : f32
      %86 = vector.broadcast %cst_31 : f32 to vector<8x128xf32>
      %87 = arith.select %83, %57, %86 : vector<8x128xi1>, vector<8x128xf32>
      %cst_32 = arith.constant 0.000000e+00 : f32
      %88 = vector.broadcast %cst_32 : f32 to vector<8x128xf32>
      %89 = arith.select %83, %36, %88 : vector<8x128xi1>, vector<8x128xf32>
      %cst_33 = arith.constant 0.000000e+00 : f32
      %90 = vector.broadcast %cst_33 : f32 to vector<8x128xf32>
      %91 = arith.select %83, %39, %90 : vector<8x128xi1>, vector<8x128xf32>
      %cst_34 = arith.constant 0.000000e+00 : f32
      %92 = vector.broadcast %cst_34 : f32 to vector<8x128xf32>
      %93 = arith.select %83, %72, %92 : vector<8x128xi1>, vector<8x128xf32>
      %94 = arith.mulf %85, %89 : vector<8x128xf32>
      %95 = arith.mulf %87, %91 : vector<8x128xf32>
      %96 = arith.addf %13, %94 : vector<8x128xf32>
      %97 = arith.addf %14, %89 : vector<8x128xf32>
      %98 = arith.addf %15, %85 : vector<8x128xf32>
      %99 = arith.addf %16, %95 : vector<8x128xf32>
      %100 = arith.addf %17, %91 : vector<8x128xf32>
      %101 = arith.addf %18, %87 : vector<8x128xf32>
      %102 = arith.addf %19, %93 : vector<8x128xf32>
      %c1_i32_35 = arith.constant 1 : i32
      %c0_i32_36 = arith.constant 0 : i32
      %103 = arith.cmpi eq, %arg2, %c0_i32_36 : i32
      %104 = arith.extui %103 : i1 to i32
      %c0_i32_37 = arith.constant 0 : i32
      %105 = arith.cmpi ne, %104, %c0_i32_37 : i32
      scf.if %105 {
        %c0_40 = arith.constant 0 : index
        %c0_41 = arith.constant 0 : index
        %c0_42 = arith.constant 0 : index
        %109 = vector.load %arg6[%c0_40, %c0_41, %c0_42] : memref<7x8x128xf32, #tpu.memory_space<vmem>>, vector<1x8x128xf32>
        %110 = vector.shape_cast %109 : vector<1x8x128xf32> to vector<8x128xf32>
        %111 = vector.shape_cast %96 : vector<8x128xf32> to vector<1x8x128xf32>
        tpu.vector_store %arg6[%c0_40, %c0_41, %c0_42], %111 {strides = array<i32>} : memref<7x8x128xf32, #tpu.memory_space<vmem>>, vector<1x8x128xf32>,
        %c1_43 = arith.constant 1 : index
        %c0_44 = arith.constant 0 : index
        %c0_45 = arith.constant 0 : index
        %112 = vector.load %arg6[%c1_43, %c0_44, %c0_45] : memref<7x8x128xf32, #tpu.memory_space<vmem>>, vector<1x8x128xf32>
        %113 = vector.shape_cast %112 : vector<1x8x128xf32> to vector<8x128xf32>
        %114 = vector.shape_cast %97 : vector<8x128xf32> to vector<1x8x128xf32>
        tpu.vector_store %arg6[%c1_43, %c0_44, %c0_45], %114 {strides = array<i32>} : memref<7x8x128xf32, #tpu.memory_space<vmem>>, vector<1x8x128xf32>,
        %c2_46 = arith.constant 2 : index
        %c0_47 = arith.constant 0 : index
        %c0_48 = arith.constant 0 : index
        %115 = vector.load %arg6[%c2_46, %c0_47, %c0_48] : memref<7x8x128xf32, #tpu.memory_space<vmem>>, vector<1x8x128xf32>
        %116 = vector.shape_cast %115 : vector<1x8x128xf32> to vector<8x128xf32>
        %117 = vector.shape_cast %98 : vector<8x128xf32> to vector<1x8x128xf32>
        tpu.vector_store %arg6[%c2_46, %c0_47, %c0_48], %117 {strides = array<i32>} : memref<7x8x128xf32, #tpu.memory_space<vmem>>, vector<1x8x128xf32>,
        %c3 = arith.constant 3 : index
        %c0_49 = arith.constant 0 : index
        %c0_50 = arith.constant 0 : index
        %118 = vector.load %arg6[%c3, %c0_49, %c0_50] : memref<7x8x128xf32, #tpu.memory_space<vmem>>, vector<1x8x128xf32>
        %119 = vector.shape_cast %118 : vector<1x8x128xf32> to vector<8x128xf32>
        %120 = vector.shape_cast %99 : vector<8x128xf32> to vector<1x8x128xf32>
        tpu.vector_store %arg6[%c3, %c0_49, %c0_50], %120 {strides = array<i32>} : memref<7x8x128xf32, #tpu.memory_space<vmem>>, vector<1x8x128xf32>,
        %c4 = arith.constant 4 : index
        %c0_51 = arith.constant 0 : index
        %c0_52 = arith.constant 0 : index
        %121 = vector.load %arg6[%c4, %c0_51, %c0_52] : memref<7x8x128xf32, #tpu.memory_space<vmem>>, vector<1x8x128xf32>
        %122 = vector.shape_cast %121 : vector<1x8x128xf32> to vector<8x128xf32>
        %123 = vector.shape_cast %100 : vector<8x128xf32> to vector<1x8x128xf32>
        tpu.vector_store %arg6[%c4, %c0_51, %c0_52], %123 {strides = array<i32>} : memref<7x8x128xf32, #tpu.memory_space<vmem>>, vector<1x8x128xf32>,
        %c5 = arith.constant 5 : index
        %c0_53 = arith.constant 0 : index
        %c0_54 = arith.constant 0 : index
        %124 = vector.load %arg6[%c5, %c0_53, %c0_54] : memref<7x8x128xf32, #tpu.memory_space<vmem>>, vector<1x8x128xf32>
        %125 = vector.shape_cast %124 : vector<1x8x128xf32> to vector<8x128xf32>
        %126 = vector.shape_cast %101 : vector<8x128xf32> to vector<1x8x128xf32>
        tpu.vector_store %arg6[%c5, %c0_53, %c0_54], %126 {strides = array<i32>} : memref<7x8x128xf32, #tpu.memory_space<vmem>>, vector<1x8x128xf32>,
        %c6 = arith.constant 6 : index
        %c0_55 = arith.constant 0 : index
        %c0_56 = arith.constant 0 : index
        %127 = vector.load %arg6[%c6, %c0_55, %c0_56] : memref<7x8x128xf32, #tpu.memory_space<vmem>>, vector<1x8x128xf32>
        %128 = vector.shape_cast %127 : vector<1x8x128xf32> to vector<8x128xf32>
        %129 = vector.shape_cast %102 : vector<8x128xf32> to vector<1x8x128xf32>
        tpu.vector_store %arg6[%c6, %c0_55, %c0_56], %129 {strides = array<i32>} : memref<7x8x128xf32, #tpu.memory_space<vmem>>, vector<1x8x128xf32>,
      } else {
      }
      %c0_i32_38 = arith.constant 0 : i32
      %106 = arith.cmpi ne, %arg2, %c0_i32_38 : i32
      %107 = arith.extui %106 : i1 to i32
      %c0_i32_39 = arith.constant 0 : i32
      %108 = arith.cmpi ne, %107, %c0_i32_39 : i32
      scf.if %108 {
        %c0_40 = arith.constant 0 : index
        %c0_41 = arith.constant 0 : index
        %c0_42 = arith.constant 0 : index
        %109 = vector.load %arg6[%c0_40, %c0_41, %c0_42] : memref<7x8x128xf32, #tpu.memory_space<vmem>>, vector<1x8x128xf32>
        %110 = vector.shape_cast %109 : vector<1x8x128xf32> to vector<8x128xf32>
        %111 = arith.addf %110, %96 : vector<8x128xf32>
        %c0_43 = arith.constant 0 : index
        %c0_44 = arith.constant 0 : index
        %c0_45 = arith.constant 0 : index
        %112 = vector.load %arg6[%c0_43, %c0_44, %c0_45] : memref<7x8x128xf32, #tpu.memory_space<vmem>>, vector<1x8x128xf32>
        %113 = vector.shape_cast %112 : vector<1x8x128xf32> to vector<8x128xf32>
        %114 = vector.shape_cast %111 : vector<8x128xf32> to vector<1x8x128xf32>
        tpu.vector_store %arg6[%c0_43, %c0_44, %c0_45], %114 {strides = array<i32>} : memref<7x8x128xf32, #tpu.memory_space<vmem>>, vector<1x8x128xf32>,
        %c1_46 = arith.constant 1 : index
        %c0_47 = arith.constant 0 : index
        %c0_48 = arith.constant 0 : index
        %115 = vector.load %arg6[%c1_46, %c0_47, %c0_48] : memref<7x8x128xf32, #tpu.memory_space<vmem>>, vector<1x8x128xf32>
        %116 = vector.shape_cast %115 : vector<1x8x128xf32> to vector<8x128xf32>
        %117 = arith.addf %116, %97 : vector<8x128xf32>
        %c1_49 = arith.constant 1 : index
        %c0_50 = arith.constant 0 : index
        %c0_51 = arith.constant 0 : index
        %118 = vector.load %arg6[%c1_49, %c0_50, %c0_51] : memref<7x8x128xf32, #tpu.memory_space<vmem>>, vector<1x8x128xf32>
        %119 = vector.shape_cast %118 : vector<1x8x128xf32> to vector<8x128xf32>
        %120 = vector.shape_cast %117 : vector<8x128xf32> to vector<1x8x128xf32>
        tpu.vector_store %arg6[%c1_49, %c0_50, %c0_51], %120 {strides = array<i32>} : memref<7x8x128xf32, #tpu.memory_space<vmem>>, vector<1x8x128xf32>,
        %c2_52 = arith.constant 2 : index
        %c0_53 = arith.constant 0 : index
        %c0_54 = arith.constant 0 : index
        %121 = vector.load %arg6[%c2_52, %c0_53, %c0_54] : memref<7x8x128xf32, #tpu.memory_space<vmem>>, vector<1x8x128xf32>
        %122 = vector.shape_cast %121 : vector<1x8x128xf32> to vector<8x128xf32>
        %123 = arith.addf %122, %98 : vector<8x128xf32>
        %c2_55 = arith.constant 2 : index
        %c0_56 = arith.constant 0 : index
        %c0_57 = arith.constant 0 : index
        %124 = vector.load %arg6[%c2_55, %c0_56, %c0_57] : memref<7x8x128xf32, #tpu.memory_space<vmem>>, vector<1x8x128xf32>
        %125 = vector.shape_cast %124 : vector<1x8x128xf32> to vector<8x128xf32>
        %126 = vector.shape_cast %123 : vector<8x128xf32> to vector<1x8x128xf32>
        tpu.vector_store %arg6[%c2_55, %c0_56, %c0_57], %126 {strides = array<i32>} : memref<7x8x128xf32, #tpu.memory_space<vmem>>, vector<1x8x128xf32>,
        %c3 = arith.constant 3 : index
        %c0_58 = arith.constant 0 : index
        %c0_59 = arith.constant 0 : index
        %127 = vector.load %arg6[%c3, %c0_58, %c0_59] : memref<7x8x128xf32, #tpu.memory_space<vmem>>, vector<1x8x128xf32>
        %128 = vector.shape_cast %127 : vector<1x8x128xf32> to vector<8x128xf32>
        %129 = arith.addf %128, %99 : vector<8x128xf32>
        %c3_60 = arith.constant 3 : index
        %c0_61 = arith.constant 0 : index
        %c0_62 = arith.constant 0 : index
        %130 = vector.load %arg6[%c3_60, %c0_61, %c0_62] : memref<7x8x128xf32, #tpu.memory_space<vmem>>, vector<1x8x128xf32>
        %131 = vector.shape_cast %130 : vector<1x8x128xf32> to vector<8x128xf32>
        %132 = vector.shape_cast %129 : vector<8x128xf32> to vector<1x8x128xf32>
        tpu.vector_store %arg6[%c3_60, %c0_61, %c0_62], %132 {strides = array<i32>} : memref<7x8x128xf32, #tpu.memory_space<vmem>>, vector<1x8x128xf32>,
        %c4 = arith.constant 4 : index
        %c0_63 = arith.constant 0 : index
        %c0_64 = arith.constant 0 : index
        %133 = vector.load %arg6[%c4, %c0_63, %c0_64] : memref<7x8x128xf32, #tpu.memory_space<vmem>>, vector<1x8x128xf32>
        %134 = vector.shape_cast %133 : vector<1x8x128xf32> to vector<8x128xf32>
        %135 = arith.addf %134, %100 : vector<8x128xf32>
        %c4_65 = arith.constant 4 : index
        %c0_66 = arith.constant 0 : index
        %c0_67 = arith.constant 0 : index
        %136 = vector.load %arg6[%c4_65, %c0_66, %c0_67] : memref<7x8x128xf32, #tpu.memory_space<vmem>>, vector<1x8x128xf32>
        %137 = vector.shape_cast %136 : vector<1x8x128xf32> to vector<8x128xf32>
        %138 = vector.shape_cast %135 : vector<8x128xf32> to vector<1x8x128xf32>
        tpu.vector_store %arg6[%c4_65, %c0_66, %c0_67], %138 {strides = array<i32>} : memref<7x8x128xf32, #tpu.memory_space<vmem>>, vector<1x8x128xf32>,
        %c5 = arith.constant 5 : index
        %c0_68 = arith.constant 0 : index
        %c0_69 = arith.constant 0 : index
        %139 = vector.load %arg6[%c5, %c0_68, %c0_69] : memref<7x8x128xf32, #tpu.memory_space<vmem>>, vector<1x8x128xf32>
        %140 = vector.shape_cast %139 : vector<1x8x128xf32> to vector<8x128xf32>
        %141 = arith.addf %140, %101 : vector<8x128xf32>
        %c5_70 = arith.constant 5 : index
        %c0_71 = arith.constant 0 : index
        %c0_72 = arith.constant 0 : index
        %142 = vector.load %arg6[%c5_70, %c0_71, %c0_72] : memref<7x8x128xf32, #tpu.memory_space<vmem>>, vector<1x8x128xf32>
        %143 = vector.shape_cast %142 : vector<1x8x128xf32> to vector<8x128xf32>
        %144 = vector.shape_cast %141 : vector<8x128xf32> to vector<1x8x128xf32>
        tpu.vector_store %arg6[%c5_70, %c0_71, %c0_72], %144 {strides = array<i32>} : memref<7x8x128xf32, #tpu.memory_space<vmem>>, vector<1x8x128xf32>,
        %c6 = arith.constant 6 : index
        %c0_73 = arith.constant 0 : index
        %c0_74 = arith.constant 0 : index
        %145 = vector.load %arg6[%c6, %c0_73, %c0_74] : memref<7x8x128xf32, #tpu.memory_space<vmem>>, vector<1x8x128xf32>
        %146 = vector.shape_cast %145 : vector<1x8x128xf32> to vector<8x128xf32>
        %147 = arith.addf %146, %102 : vector<8x128xf32>
        %c6_75 = arith.constant 6 : index
        %c0_76 = arith.constant 0 : index
        %c0_77 = arith.constant 0 : index
        %148 = vector.load %arg6[%c6_75, %c0_76, %c0_77] : memref<7x8x128xf32, #tpu.memory_space<vmem>>, vector<1x8x128xf32>
        %149 = vector.shape_cast %148 : vector<1x8x128xf32> to vector<8x128xf32>
        %150 = vector.shape_cast %147 : vector<8x128xf32> to vector<1x8x128xf32>
        tpu.vector_store %arg6[%c6_75, %c0_76, %c0_77], %150 {strides = array<i32>} : memref<7x8x128xf32, #tpu.memory_space<vmem>>, vector<1x8x128xf32>,
      } else {
      }
    } else {
    }
    %true = arith.constant true
    %7 = arith.xori %4, %true : i1
    %8 = arith.extui %7 : i1 to i32
    %c0_i32_1 = arith.constant 0 : i32
    %9 = arith.cmpi ne, %8, %c0_i32_1 : i32
    scf.if %9 {
      %cst = arith.constant 0.000000e+00 : f32
      %13 = vector.broadcast %cst : f32 to vector<8x128xf32>
      %cst_4 = arith.constant 0.000000e+00 : f32
      %14 = vector.broadcast %cst_4 : f32 to vector<8x128xf32>
      %cst_5 = arith.constant 0.000000e+00 : f32
      %15 = vector.broadcast %cst_5 : f32 to vector<8x128xf32>
      %cst_6 = arith.constant 0.000000e+00 : f32
      %16 = vector.broadcast %cst_6 : f32 to vector<8x128xf32>
      %cst_7 = arith.constant 0.000000e+00 : f32
      %17 = vector.broadcast %cst_7 : f32 to vector<8x128xf32>
      %cst_8 = arith.constant 0.000000e+00 : f32
      %18 = vector.broadcast %cst_8 : f32 to vector<8x128xf32>
      %cst_9 = arith.constant 0.000000e+00 : f32
      %19 = vector.broadcast %cst_9 : f32 to vector<8x128xf32>
      %c0_i32_10 = arith.constant 0 : i32
      %c8_i32 = arith.constant 8 : i32
      %20 = arith.muli %c0_i32_10, %c8_i32 : i32
      %21 = tpu.assume_multiple %20, 8 : i32
      %c0 = arith.constant 0 : index
      %c0_11 = arith.constant 0 : index
      %22 = arith.index_cast %21 : i32 to index
      %c0_12 = arith.constant 0 : index
      %23 = vector.load %arg3[%c0, %c0_11, %22, %c0_12] : memref<1x3x8x128xf32, #tpu.memory_space<vmem>>, vector<1x1x8x128xf32>
      %24 = vector.shape_cast %23 : vector<1x1x8x128xf32> to vector<8x128xf32>
      %c0_13 = arith.constant 0 : index
      %c1 = arith.constant 1 : index
      %25 = arith.index_cast %21 : i32 to index
      %c0_14 = arith.constant 0 : index
      %26 = vector.load %arg3[%c0_13, %c1, %25, %c0_14] : memref<1x3x8x128xf32, #tpu.memory_space<vmem>>, vector<1x1x8x128xf32>
      %27 = vector.shape_cast %26 : vector<1x1x8x128xf32> to vector<8x128xf32>
      %c0_15 = arith.constant 0 : index
      %c2 = arith.constant 2 : index
      %28 = arith.index_cast %21 : i32 to index
      %c0_16 = arith.constant 0 : index
      %29 = vector.load %arg3[%c0_15, %c2, %28, %c0_16] : memref<1x3x8x128xf32, #tpu.memory_space<vmem>>, vector<1x1x8x128xf32>
      %30 = vector.shape_cast %29 : vector<1x1x8x128xf32> to vector<8x128xf32>
      %c0_17 = arith.constant 0 : index
      %c0_18 = arith.constant 0 : index
      %31 = arith.index_cast %21 : i32 to index
      %c0_19 = arith.constant 0 : index
      %32 = vector.load %arg4[%c0_17, %c0_18, %31, %c0_19] : memref<1x3x8x128xf32, #tpu.memory_space<vmem>>, vector<1x1x8x128xf32>
      %33 = vector.shape_cast %32 : vector<1x1x8x128xf32> to vector<8x128xf32>
      %c0_20 = arith.constant 0 : index
      %c1_21 = arith.constant 1 : index
      %34 = arith.index_cast %21 : i32 to index
      %c0_22 = arith.constant 0 : index
      %35 = vector.load %arg4[%c0_20, %c1_21, %34, %c0_22] : memref<1x3x8x128xf32, #tpu.memory_space<vmem>>, vector<1x1x8x128xf32>
      %36 = vector.shape_cast %35 : vector<1x1x8x128xf32> to vector<8x128xf32>
      %c0_23 = arith.constant 0 : index
      %c2_24 = arith.constant 2 : index
      %37 = arith.index_cast %21 : i32 to index
      %c0_25 = arith.constant 0 : index
      %38 = vector.load %arg4[%c0_23, %c2_24, %37, %c0_25] : memref<1x3x8x128xf32, #tpu.memory_space<vmem>>, vector<1x1x8x128xf32>
      %39 = vector.shape_cast %38 : vector<1x1x8x128xf32> to vector<8x128xf32>
      %40 = arith.maximumf %24, %27 : vector<8x128xf32>
      %41 = arith.maximumf %40, %30 : vector<8x128xf32>
      %42 = arith.subf %24, %41 : vector<8x128xf32>
      %43 = math.exp %42 : vector<8x128xf32>
      %44 = arith.subf %27, %41 : vector<8x128xf32>
      %45 = math.exp %44 : vector<8x128xf32>
      %46 = arith.subf %30, %41 : vector<8x128xf32>
      %47 = math.exp %46 : vector<8x128xf32>
      %48 = arith.addf %43, %45 : vector<8x128xf32>
      %49 = arith.addf %48, %47 : vector<8x128xf32>
      %50 = tpu.reciprocal %49 {approx = true} : vector<8x128xf32> -> vector<8x128xf32>
      %51 = arith.mulf %49, %50 : vector<8x128xf32>
      %cst_26 = arith.constant 2.000000e+00 : f32
      %52 = vector.broadcast %cst_26 : f32 to vector<8x128xf32>
      %53 = arith.subf %52, %51 : vector<8x128xf32>
      %54 = arith.mulf %50, %53 : vector<8x128xf32>
      %55 = arith.mulf %43, %54 : vector<8x128xf32>
      %56 = arith.mulf %45, %54 : vector<8x128xf32>
      %57 = arith.mulf %47, %54 : vector<8x128xf32>
      %58 = math.exp %55 : vector<8x128xf32>
      %59 = math.exp %56 : vector<8x128xf32>
      %60 = arith.addf %58, %59 : vector<8x128xf32>
      %61 = math.exp %57 : vector<8x128xf32>
      %62 = arith.addf %60, %61 : vector<8x128xf32>
      %63 = math.log %62 : vector<8x128xf32>
      %64 = arith.cmpf oge, %33, %36 : vector<8x128xf32>
      %65 = arith.cmpf oge, %33, %39 : vector<8x128xf32>
      %66 = arith.andi %64, %65 : vector<8x128xi1>
      %cst_27 = arith.constant dense<true> : vector<8x128xi1>
      %67 = arith.xori %66, %cst_27 : vector<8x128xi1>
      %68 = arith.cmpf oge, %36, %39 : vector<8x128xf32>
      %69 = arith.andi %67, %68 : vector<8x128xi1>
      %70 = arith.select %69, %56, %57 : vector<8x128xi1>, vector<8x128xf32>
      %71 = arith.select %66, %55, %70 : vector<8x128xi1>, vector<8x128xf32>
      %72 = arith.subf %63, %71 : vector<8x128xf32>
      %73 = arith.mulf %56, %36 : vector<8x128xf32>
      %74 = arith.mulf %57, %39 : vector<8x128xf32>
      %75 = arith.addf %13, %73 : vector<8x128xf32>
      %76 = arith.addf %14, %36 : vector<8x128xf32>
      %77 = arith.addf %15, %56 : vector<8x128xf32>
      %78 = arith.addf %16, %74 : vector<8x128xf32>
      %79 = arith.addf %17, %39 : vector<8x128xf32>
      %80 = arith.addf %18, %57 : vector<8x128xf32>
      %81 = arith.addf %19, %72 : vector<8x128xf32>
      %c1_i32_28 = arith.constant 1 : i32
      %c0_i32_29 = arith.constant 0 : i32
      %82 = arith.cmpi eq, %arg2, %c0_i32_29 : i32
      %83 = arith.extui %82 : i1 to i32
      %c0_i32_30 = arith.constant 0 : i32
      %84 = arith.cmpi ne, %83, %c0_i32_30 : i32
      scf.if %84 {
        %c0_33 = arith.constant 0 : index
        %c0_34 = arith.constant 0 : index
        %c0_35 = arith.constant 0 : index
        %88 = vector.load %arg6[%c0_33, %c0_34, %c0_35] : memref<7x8x128xf32, #tpu.memory_space<vmem>>, vector<1x8x128xf32>
        %89 = vector.shape_cast %88 : vector<1x8x128xf32> to vector<8x128xf32>
        %90 = vector.shape_cast %75 : vector<8x128xf32> to vector<1x8x128xf32>
        tpu.vector_store %arg6[%c0_33, %c0_34, %c0_35], %90 {strides = array<i32>} : memref<7x8x128xf32, #tpu.memory_space<vmem>>, vector<1x8x128xf32>,
        %c1_36 = arith.constant 1 : index
        %c0_37 = arith.constant 0 : index
        %c0_38 = arith.constant 0 : index
        %91 = vector.load %arg6[%c1_36, %c0_37, %c0_38] : memref<7x8x128xf32, #tpu.memory_space<vmem>>, vector<1x8x128xf32>
        %92 = vector.shape_cast %91 : vector<1x8x128xf32> to vector<8x128xf32>
        %93 = vector.shape_cast %76 : vector<8x128xf32> to vector<1x8x128xf32>
        tpu.vector_store %arg6[%c1_36, %c0_37, %c0_38], %93 {strides = array<i32>} : memref<7x8x128xf32, #tpu.memory_space<vmem>>, vector<1x8x128xf32>,
        %c2_39 = arith.constant 2 : index
        %c0_40 = arith.constant 0 : index
        %c0_41 = arith.constant 0 : index
        %94 = vector.load %arg6[%c2_39, %c0_40, %c0_41] : memref<7x8x128xf32, #tpu.memory_space<vmem>>, vector<1x8x128xf32>
        %95 = vector.shape_cast %94 : vector<1x8x128xf32> to vector<8x128xf32>
        %96 = vector.shape_cast %77 : vector<8x128xf32> to vector<1x8x128xf32>
        tpu.vector_store %arg6[%c2_39, %c0_40, %c0_41], %96 {strides = array<i32>} : memref<7x8x128xf32, #tpu.memory_space<vmem>>, vector<1x8x128xf32>,
        %c3 = arith.constant 3 : index
        %c0_42 = arith.constant 0 : index
        %c0_43 = arith.constant 0 : index
        %97 = vector.load %arg6[%c3, %c0_42, %c0_43] : memref<7x8x128xf32, #tpu.memory_space<vmem>>, vector<1x8x128xf32>
        %98 = vector.shape_cast %97 : vector<1x8x128xf32> to vector<8x128xf32>
        %99 = vector.shape_cast %78 : vector<8x128xf32> to vector<1x8x128xf32>
        tpu.vector_store %arg6[%c3, %c0_42, %c0_43], %99 {strides = array<i32>} : memref<7x8x128xf32, #tpu.memory_space<vmem>>, vector<1x8x128xf32>,
        %c4 = arith.constant 4 : index
        %c0_44 = arith.constant 0 : index
        %c0_45 = arith.constant 0 : index
        %100 = vector.load %arg6[%c4, %c0_44, %c0_45] : memref<7x8x128xf32, #tpu.memory_space<vmem>>, vector<1x8x128xf32>
        %101 = vector.shape_cast %100 : vector<1x8x128xf32> to vector<8x128xf32>
        %102 = vector.shape_cast %79 : vector<8x128xf32> to vector<1x8x128xf32>
        tpu.vector_store %arg6[%c4, %c0_44, %c0_45], %102 {strides = array<i32>} : memref<7x8x128xf32, #tpu.memory_space<vmem>>, vector<1x8x128xf32>,
        %c5 = arith.constant 5 : index
        %c0_46 = arith.constant 0 : index
        %c0_47 = arith.constant 0 : index
        %103 = vector.load %arg6[%c5, %c0_46, %c0_47] : memref<7x8x128xf32, #tpu.memory_space<vmem>>, vector<1x8x128xf32>
        %104 = vector.shape_cast %103 : vector<1x8x128xf32> to vector<8x128xf32>
        %105 = vector.shape_cast %80 : vector<8x128xf32> to vector<1x8x128xf32>
        tpu.vector_store %arg6[%c5, %c0_46, %c0_47], %105 {strides = array<i32>} : memref<7x8x128xf32, #tpu.memory_space<vmem>>, vector<1x8x128xf32>,
        %c6 = arith.constant 6 : index
        %c0_48 = arith.constant 0 : index
        %c0_49 = arith.constant 0 : index
        %106 = vector.load %arg6[%c6, %c0_48, %c0_49] : memref<7x8x128xf32, #tpu.memory_space<vmem>>, vector<1x8x128xf32>
        %107 = vector.shape_cast %106 : vector<1x8x128xf32> to vector<8x128xf32>
        %108 = vector.shape_cast %81 : vector<8x128xf32> to vector<1x8x128xf32>
        tpu.vector_store %arg6[%c6, %c0_48, %c0_49], %108 {strides = array<i32>} : memref<7x8x128xf32, #tpu.memory_space<vmem>>, vector<1x8x128xf32>,
      } else {
      }
      %c0_i32_31 = arith.constant 0 : i32
      %85 = arith.cmpi ne, %arg2, %c0_i32_31 : i32
      %86 = arith.extui %85 : i1 to i32
      %c0_i32_32 = arith.constant 0 : i32
      %87 = arith.cmpi ne, %86, %c0_i32_32 : i32
      scf.if %87 {
        %c0_33 = arith.constant 0 : index
        %c0_34 = arith.constant 0 : index
        %c0_35 = arith.constant 0 : index
        %88 = vector.load %arg6[%c0_33, %c0_34, %c0_35] : memref<7x8x128xf32, #tpu.memory_space<vmem>>, vector<1x8x128xf32>
        %89 = vector.shape_cast %88 : vector<1x8x128xf32> to vector<8x128xf32>
        %90 = arith.addf %89, %75 : vector<8x128xf32>
        %c0_36 = arith.constant 0 : index
        %c0_37 = arith.constant 0 : index
        %c0_38 = arith.constant 0 : index
        %91 = vector.load %arg6[%c0_36, %c0_37, %c0_38] : memref<7x8x128xf32, #tpu.memory_space<vmem>>, vector<1x8x128xf32>
        %92 = vector.shape_cast %91 : vector<1x8x128xf32> to vector<8x128xf32>
        %93 = vector.shape_cast %90 : vector<8x128xf32> to vector<1x8x128xf32>
        tpu.vector_store %arg6[%c0_36, %c0_37, %c0_38], %93 {strides = array<i32>} : memref<7x8x128xf32, #tpu.memory_space<vmem>>, vector<1x8x128xf32>,
        %c1_39 = arith.constant 1 : index
        %c0_40 = arith.constant 0 : index
        %c0_41 = arith.constant 0 : index
        %94 = vector.load %arg6[%c1_39, %c0_40, %c0_41] : memref<7x8x128xf32, #tpu.memory_space<vmem>>, vector<1x8x128xf32>
        %95 = vector.shape_cast %94 : vector<1x8x128xf32> to vector<8x128xf32>
        %96 = arith.addf %95, %76 : vector<8x128xf32>
        %c1_42 = arith.constant 1 : index
        %c0_43 = arith.constant 0 : index
        %c0_44 = arith.constant 0 : index
        %97 = vector.load %arg6[%c1_42, %c0_43, %c0_44] : memref<7x8x128xf32, #tpu.memory_space<vmem>>, vector<1x8x128xf32>
        %98 = vector.shape_cast %97 : vector<1x8x128xf32> to vector<8x128xf32>
        %99 = vector.shape_cast %96 : vector<8x128xf32> to vector<1x8x128xf32>
        tpu.vector_store %arg6[%c1_42, %c0_43, %c0_44], %99 {strides = array<i32>} : memref<7x8x128xf32, #tpu.memory_space<vmem>>, vector<1x8x128xf32>,
        %c2_45 = arith.constant 2 : index
        %c0_46 = arith.constant 0 : index
        %c0_47 = arith.constant 0 : index
        %100 = vector.load %arg6[%c2_45, %c0_46, %c0_47] : memref<7x8x128xf32, #tpu.memory_space<vmem>>, vector<1x8x128xf32>
        %101 = vector.shape_cast %100 : vector<1x8x128xf32> to vector<8x128xf32>
        %102 = arith.addf %101, %77 : vector<8x128xf32>
        %c2_48 = arith.constant 2 : index
        %c0_49 = arith.constant 0 : index
        %c0_50 = arith.constant 0 : index
        %103 = vector.load %arg6[%c2_48, %c0_49, %c0_50] : memref<7x8x128xf32, #tpu.memory_space<vmem>>, vector<1x8x128xf32>
        %104 = vector.shape_cast %103 : vector<1x8x128xf32> to vector<8x128xf32>
        %105 = vector.shape_cast %102 : vector<8x128xf32> to vector<1x8x128xf32>
        tpu.vector_store %arg6[%c2_48, %c0_49, %c0_50], %105 {strides = array<i32>} : memref<7x8x128xf32, #tpu.memory_space<vmem>>, vector<1x8x128xf32>,
        %c3 = arith.constant 3 : index
        %c0_51 = arith.constant 0 : index
        %c0_52 = arith.constant 0 : index
        %106 = vector.load %arg6[%c3, %c0_51, %c0_52] : memref<7x8x128xf32, #tpu.memory_space<vmem>>, vector<1x8x128xf32>
        %107 = vector.shape_cast %106 : vector<1x8x128xf32> to vector<8x128xf32>
        %108 = arith.addf %107, %78 : vector<8x128xf32>
        %c3_53 = arith.constant 3 : index
        %c0_54 = arith.constant 0 : index
        %c0_55 = arith.constant 0 : index
        %109 = vector.load %arg6[%c3_53, %c0_54, %c0_55] : memref<7x8x128xf32, #tpu.memory_space<vmem>>, vector<1x8x128xf32>
        %110 = vector.shape_cast %109 : vector<1x8x128xf32> to vector<8x128xf32>
        %111 = vector.shape_cast %108 : vector<8x128xf32> to vector<1x8x128xf32>
        tpu.vector_store %arg6[%c3_53, %c0_54, %c0_55], %111 {strides = array<i32>} : memref<7x8x128xf32, #tpu.memory_space<vmem>>, vector<1x8x128xf32>,
        %c4 = arith.constant 4 : index
        %c0_56 = arith.constant 0 : index
        %c0_57 = arith.constant 0 : index
        %112 = vector.load %arg6[%c4, %c0_56, %c0_57] : memref<7x8x128xf32, #tpu.memory_space<vmem>>, vector<1x8x128xf32>
        %113 = vector.shape_cast %112 : vector<1x8x128xf32> to vector<8x128xf32>
        %114 = arith.addf %113, %79 : vector<8x128xf32>
        %c4_58 = arith.constant 4 : index
        %c0_59 = arith.constant 0 : index
        %c0_60 = arith.constant 0 : index
        %115 = vector.load %arg6[%c4_58, %c0_59, %c0_60] : memref<7x8x128xf32, #tpu.memory_space<vmem>>, vector<1x8x128xf32>
        %116 = vector.shape_cast %115 : vector<1x8x128xf32> to vector<8x128xf32>
        %117 = vector.shape_cast %114 : vector<8x128xf32> to vector<1x8x128xf32>
        tpu.vector_store %arg6[%c4_58, %c0_59, %c0_60], %117 {strides = array<i32>} : memref<7x8x128xf32, #tpu.memory_space<vmem>>, vector<1x8x128xf32>,
        %c5 = arith.constant 5 : index
        %c0_61 = arith.constant 0 : index
        %c0_62 = arith.constant 0 : index
        %118 = vector.load %arg6[%c5, %c0_61, %c0_62] : memref<7x8x128xf32, #tpu.memory_space<vmem>>, vector<1x8x128xf32>
        %119 = vector.shape_cast %118 : vector<1x8x128xf32> to vector<8x128xf32>
        %120 = arith.addf %119, %80 : vector<8x128xf32>
        %c5_63 = arith.constant 5 : index
        %c0_64 = arith.constant 0 : index
        %c0_65 = arith.constant 0 : index
        %121 = vector.load %arg6[%c5_63, %c0_64, %c0_65] : memref<7x8x128xf32, #tpu.memory_space<vmem>>, vector<1x8x128xf32>
        %122 = vector.shape_cast %121 : vector<1x8x128xf32> to vector<8x128xf32>
        %123 = vector.shape_cast %120 : vector<8x128xf32> to vector<1x8x128xf32>
        tpu.vector_store %arg6[%c5_63, %c0_64, %c0_65], %123 {strides = array<i32>} : memref<7x8x128xf32, #tpu.memory_space<vmem>>, vector<1x8x128xf32>,
        %c6 = arith.constant 6 : index
        %c0_66 = arith.constant 0 : index
        %c0_67 = arith.constant 0 : index
        %124 = vector.load %arg6[%c6, %c0_66, %c0_67] : memref<7x8x128xf32, #tpu.memory_space<vmem>>, vector<1x8x128xf32>
        %125 = vector.shape_cast %124 : vector<1x8x128xf32> to vector<8x128xf32>
        %126 = arith.addf %125, %81 : vector<8x128xf32>
        %c6_68 = arith.constant 6 : index
        %c0_69 = arith.constant 0 : index
        %c0_70 = arith.constant 0 : index
        %127 = vector.load %arg6[%c6_68, %c0_69, %c0_70] : memref<7x8x128xf32, #tpu.memory_space<vmem>>, vector<1x8x128xf32>
        %128 = vector.shape_cast %127 : vector<1x8x128xf32> to vector<8x128xf32>
        %129 = vector.shape_cast %126 : vector<8x128xf32> to vector<1x8x128xf32>
        tpu.vector_store %arg6[%c6_68, %c0_69, %c0_70], %129 {strides = array<i32>} : memref<7x8x128xf32, #tpu.memory_space<vmem>>, vector<1x8x128xf32>,
      } else {
      }
    } else {
    }
    %c0_i32_2 = arith.constant 0 : i32
    %10 = arith.cmpi eq, %arg2, %c0_i32_2 : i32
    %11 = arith.extui %10 : i1 to i32
    %c0_i32_3 = arith.constant 0 : i32
    %12 = arith.cmpi ne, %11, %c0_i32_3 : i32
    scf.if %12 {
      %c0 = arith.constant 0 : index
      %c0_4 = arith.constant 0 : index
      %c0_5 = arith.constant 0 : index
      %13 = vector.load %arg6[%c0, %c0_4, %c0_5] : memref<7x8x128xf32, #tpu.memory_space<vmem>>, vector<7x8x128xf32>
      %cst = arith.constant dense<0.000000e+00> : vector<7x128xf32>
      %14 = vector.multi_reduction <add>, %13, %cst [1] : vector<7x8x128xf32> to vector<7x128xf32>
      %15 = vector.shape_cast %14 : vector<7x128xf32> to vector<1x1x7x128xf32>
      %c0_6 = arith.constant 0 : index
      %c0_7 = arith.constant 0 : index
      %c0_8 = arith.constant 0 : index
      %c0_9 = arith.constant 0 : index
      %16 = vector.load %arg5[%c0_6, %c0_7, %c0_8, %c0_9] : memref<1x1x7x128xf32, #tpu.memory_space<vmem>>, vector<1x1x7x128xf32>
      tpu.vector_store %arg5[%c0_6, %c0_7, %c0_8, %c0_9], %15 {strides = array<i32>} : memref<1x1x7x128xf32, #tpu.memory_space<vmem>>, vector<1x1x7x128xf32>,
    } else {
    }
    return
  }
  func.func @transform_0(%arg0: i32, %arg1: i32, %arg2: i32) -> (i32, i32, i32, i32) {
    %c1_i32 = arith.constant 1 : i32
    %0 = arith.muli %arg1, %c1_i32 : i32
    %1 = arith.addi %0, %arg2 : i32
    %c0_i32 = arith.constant 0 : i32
    %c0_i32_0 = arith.constant 0 : i32
    %c0_i32_1 = arith.constant 0 : i32
    return %arg0, %c0_i32, %1, %c0_i32_0 : i32, i32, i32, i32
  }
  func.func @transform_1(%arg0: i32, %arg1: i32, %arg2: i32) -> (i32, i32, i32, i32) {
    %c1_i32 = arith.constant 1 : i32
    %0 = arith.muli %arg1, %c1_i32 : i32
    %1 = arith.addi %0, %arg2 : i32
    %c0_i32 = arith.constant 0 : i32
    %c0_i32_0 = arith.constant 0 : i32
    %c0_i32_1 = arith.constant 0 : i32
    return %arg0, %c0_i32, %1, %c0_i32_0 : i32, i32, i32, i32
  }
  func.func @transform_2(%arg0: i32, %arg1: i32, %arg2: i32) -> (i32, i32, i32, i32) {
    %c0_i32 = arith.constant 0 : i32
    %c0_i32_0 = arith.constant 0 : i32
    %c0_i32_1 = arith.constant 0 : i32
    return %arg0, %arg1, %c0_i32, %c0_i32_0 : i32, i32, i32, i32
  }
}

</mosaic_0001>

<bundles_post_ra>
// kernel: loss_func.1
= control target key start
LH: loop header
LB: loop body
LE: loop exit
PB: predicated region body
PF: predicated region fallthrough
CT: control target
= control target key end

     0   :  { %s748_s9 = smov 0   ;;  %s750_s10 = smov 0   ;;  %s809_s0 = inlined_call_operand.vmem [shape: f32[2,3,8,128], index: 0, kind: input, shape index: {}]   ;;  %s810_s1 = inlined_call_operand.vmem [shape: f32[2,3,8,128], index: 1, kind: input, shape index: {}]   ;;  %s811_s2 = inlined_call_operand.vmem [shape: f32[2,1,7,128], index: 2, kind: output, shape index: {}]  }
   0x1   :  { %s752_s11 = smov 0  }
   0x2 LB: > { %s31_s12 = sadd.s32 1, %s726_s10  ;;  %p652_p0 = scmp.ge.s32.totalorder %s730_s11, 1  ;;  %s730_s11 = sphi %s752_s11, %s12_s11   ;;  %s726_s10 = sphi %s750_s10, %s815_s10   ;;  %s722_s9 = sphi %s748_s9, %s814_s9  }
   0x3   : > { %p33_p1 = scmp.ge.s32.totalorder %s31_s12, 2  ;;  %p161_p2 = scmp.lt.s32.totalorder %s730_s11, 3 }
   0x5   : > { %s817_s12 = smov (%p33_p1, %s31_s12), 0  ;;  %p162_p3 = pnand %p652_p0, %p161_p2 }
   0x6   : > { %p199_p4 = scmp.lt.s32.totalorder (!%p162_p3), %s722_s9, 1 }
   0x7   : > { %165 = sbr.rel (%p162_p3) target bundleno = 92 (0x5c), region = 28 }
   0xc   : > { %s819_s9 = smov (!%p199_p4, %s722_s9), 1  ;;  %v283_v12 = vlaneseq  ;;  %vm732_vm4 = vmmov 1   ;;  %vm528_vm8 = vcmask 1041409   ;;  %vm530_vm9 = vcmask 1042434  }
   0xd   : > { %s666_s13 = smul.u32 24, %s819_s9  ;;  %vm532_vm10 = vcmask 1043459   ;;  %vm534_vm11 = vcmask 1044484   ;;  %vm536_vm12 = vcmask 1045509   ;;  %s655_s20 = sshll.u32 %s819_s9, 3  ;;  %vm538_vm13 = vcmask 1046534  }
   0xe   : > { %v284_v17 = vshrl.u32 %v283_v12, 7  ;;  %v286_v18 = vand.u32 127, %v283_v12  ;;  %s224_s23 = scalar_lea.vmem %s811_s2, %s655_s20 }
   0xf   : > { %s206_s16 = scalar_lea.vmem %s809_s0, %s666_s13  ;;  %s216_s19 = scalar_lea.vmem %s810_s1, %s666_s13 }
  0x10   : > { %v232_v0 = vld [vmem:[%s206_s16] sm:$0xff]  ;;  %v656_v1 = vld [vmem:[%s206_s16 + $0x8] sm:$0xff]  ;;  %v657_v2 = vld [vmem:[%s206_s16 + $0x10] sm:$0xff]  ;;  %v291_v19 = vmul.u32 128, %v284_v17 }
  0x11   : > { %v244_v3 = vmax.f32 %v232_v0, %v656_v1  ;;  %v658_v24 = vld [vmem:[%s216_s19 + $0x8] sm:$0xff]  ;;  %v659_v26 = vld [vmem:[%s216_s19 + $0x10] sm:$0xff]  ;;  %v239_v38 = vld [vmem:[%s216_s19] sm:$0xff] }
  0x12   : > { %v772_v21 = vadd.s32 %v291_v19, %v286_v18  ;;  %vm274_vm1 = vcmp.ge.f32.partialorder %v239_v38, %v658_v24  ;;  %vm275_vm2 = vcmp.ge.f32.partialorder %v239_v38, %v659_v26  ;;  %vm278_vm6 = vcmp.ge.f32.partialorder %v658_v24, %v659_v26 }
  0x13   : > { %v245_v4 = vmax.f32 %v244_v3, %v657_v2  ;;  %vm786_vm3 = vmand %vm274_vm1, %vm275_vm2 }
  0x14   : > { %vm293_vm0 = vcmp.lt.s32.totalorder %v772_v21, 512  ;;  %vm277_vm5 = vmxor %vm786_vm3, %vm732_vm4 }
  0x15   : > { %v246_v5 = vsub.f32 %v232_v0, %v245_v4  ;;  %v249_v6 = vsub.f32 %v656_v1, %v245_v4  ;;  %v252_v7 = vsub.f32 %v657_v2, %v245_v4  ;;  %v296_v30 = vsel %vm293_vm0, %v658_v24, 0.0  ;;  %vm279_vm7 = vmand %vm277_vm5, %vm278_vm6 }
  0x16   : > { %v297_v31 = vsel %vm293_vm0, %v659_v26, 0.0  ;;  %v485_v32 = vrot.slane %v296_v30, 4 }
  0x17   : > { %v247_v8 = vmul.f32 1.442695, %v246_v5  ;;  %v250_v9 = vmul.f32 1.442695, %v249_v6  ;;  %v253_v10 = vmul.f32 1.442695, %v252_v7 }
  0x18   : > { %v486_v42 = vadd.f32 %v485_v32, %v296_v30  ;;  %v503_v51 = vrot.slane %v297_v31, 4 }
  0x19   : > { %692 = vpow2.f32 %v247_v8 }
  0x1a   : > { %694 = vpow2.f32 %v250_v9  ;;  %v487_v47 = vrot.slane %v486_v42, 2  ;;  %v504_v61 = vadd.f32 %v503_v51, %v297_v31 }
  0x1b   : > { %696 = vpow2.f32 %v253_v10 }
  0x1c   : > { %v488_v58 = vadd.f32 %v487_v47, %v486_v42  ;;  %v505_v3 = vrot.slane %v504_v61, 2 }
  0x1e   : > { %v489_v1 = vrot.slane %v488_v58, 1  ;;  %v506_v12 = vadd.f32 %v505_v3, %v504_v61 }
  0x1f   : > { %v693_v11 = vpop.eup %692 }
  0x20   : > { %v695_v13 = vpop.eup %694  ;;  %v490_v8 = vadd.f32 %v489_v1, %v488_v58  ;;  %v507_v19 = vrot.slane %v506_v12, 1 }
  0x21   : > { %v697_v14 = vpop.eup %696  ;;  %v255_v15 = vadd.f32 %v695_v13, %v693_v11 }
  0x22   : > { %v508_v26 = vadd.f32 %v507_v19, %v506_v12 }
  0x23   : > { %v256_v16 = vadd.f32 %v697_v14, %v255_v15 }
  0x25   : > { %698 = vrcp.f32 %v256_v16 }
  0x2b   : > { %v699_v20 = vpop.eup %698 }
  0x2c   : > { %v258_v22 = vmul.f32 %v699_v20, %v256_v16 }
  0x2e   : > { %v259_v23 = vsub.f32 2.0, %v258_v22 }
  0x30   : > { %v260_v25 = vmul.f32 %v699_v20, %v259_v23 }
  0x32   : > { %v261_v27 = vmul.f32 %v693_v11, %v260_v25  ;;  %v262_v28 = vmul.f32 %v695_v13, %v260_v25  ;;  %v263_v29 = vmul.f32 %v697_v14, %v260_v25 }
  0x34   : > { %v264_v33 = vmul.f32 1.442695, %v261_v27  ;;  %v266_v34 = vmul.f32 1.442695, %v262_v28  ;;  %v269_v35 = vmul.f32 1.442695, %v263_v29  ;;  %v280_v4 = vsel %vm279_vm7, %v262_v28, %v263_v29 }
  0x35   : > { %v294_v36 = vsel %vm293_vm0, %v262_v28, 0.0  ;;  %v295_v37 = vsel %vm293_vm0, %v263_v29, 0.0  ;;  %v281_v11 = vsel %vm786_vm3, %v261_v27, %v280_v4 }
  0x36   : > { %700 = vpow2.f32 %v264_v33  ;;  %v299_v39 = vmul.f32 %v296_v30, %v294_v36  ;;  %v300_v40 = vmul.f32 %v297_v31, %v295_v37  ;;  %v491_v41 = vrot.slane %v294_v36, 4 }
  0x37   : > { %702 = vpow2.f32 %v266_v34  ;;  %v509_v59 = vrot.slane %v295_v37, 4 }
  0x38   : > { %704 = vpow2.f32 %v269_v35  ;;  %v479_v43 = vrot.slane %v299_v39, 4  ;;  %v497_v44 = vrot.slane %v300_v40, 4  ;;  %v492_v46 = vadd.f32 %v491_v41, %v294_v36 }
  0x39   : > { %v510_v2 = vadd.f32 %v509_v59, %v295_v37 }
  0x3a   : > { %v480_v45 = vadd.f32 %v479_v43, %v299_v39  ;;  %v498_v53 = vadd.f32 %v497_v44, %v300_v40  ;;  %v493_v56 = vrot.slane %v492_v46, 2 }
  0x3b   : > { %v511_v9 = vrot.slane %v510_v2, 2 }
  0x3c   : > { %v701_v48 = vpop.eup %700  ;;  %v481_v50 = vrot.slane %v480_v45, 2  ;;  %v499_v62 = vrot.slane %v498_v53, 2  ;;  %v494_v63 = vadd.f32 %v493_v56, %v492_v46 }
  0x3d   : > { %v703_v52 = vpop.eup %702  ;;  %v512_v17 = vadd.f32 %v511_v9, %v510_v2 }
  0x3e   : > { %v705_v54 = vpop.eup %704  ;;  %v268_v55 = vadd.f32 %v703_v52, %v701_v48  ;;  %v482_v57 = vadd.f32 %v481_v50, %v480_v45  ;;  %v500_v5 = vadd.f32 %v499_v62, %v498_v53  ;;  %v495_v6 = vrot.slane %v494_v63, 1 }
  0x3f   : > { %v513_v25 = vrot.slane %v512_v17, 1 }
  0x40   : > { %v271_v60 = vadd.f32 %v705_v54, %v268_v55  ;;  %v483_v0 = vrot.slane %v482_v57, 1  ;;  %v501_v14 = vrot.slane %v500_v5, 1  ;;  %v496_v15 = vadd.f32 %v495_v6, %v494_v63 }
  0x41   : > { %v514_v30 = vadd.f32 %v513_v25, %v512_v17 }
  0x42   : > { %706 = vlog2.f32 %v271_v60  ;;  %v484_v7 = vadd.f32 %v483_v0, %v482_v57  ;;  %v502_v22 = vadd.f32 %v501_v14, %v500_v5 }
  0x44   : > { %v529_v18 = vsel %vm528_vm8, %v490_v8, %v484_v7 }
  0x45   : > { %v531_v24 = vsel %vm530_vm9, %v496_v15, %v529_v18 }
  0x46   : > { %v533_v28 = vsel %vm532_vm10, %v502_v22, %v531_v24 }
  0x47   : > { %v535_v32 = vsel %vm534_vm11, %v508_v26, %v533_v28 }
  0x48   : > { %v707_v10 = vpop.eup %706  ;;  %v537_v34 = vsel %vm536_vm12, %v514_v30, %v535_v32 }
  0x49   : > { %v273_v13 = vmul.f32 0.6931472, %v707_v10 }
  0x4b   : > { %v282_v16 = vsub.f32 %v273_v13, %v281_v11 }
  0x4d   : > { %v298_v20 = vsel %vm293_vm0, %v282_v16, 0.0 }
  0x4e   : > { %v515_v23 = vrot.slane %v298_v20, 4 }
  0x50   : > { %v516_v27 = vadd.f32 %v515_v23, %v298_v20 }
  0x52   : > { %v517_v29 = vrot.slane %v516_v27, 2 }
  0x54   : > { %v518_v31 = vadd.f32 %v517_v29, %v516_v27 }
  0x56   : > { %v519_v33 = vrot.slane %v518_v31, 1 }
  0x58   : > { %v520_v21 = vadd.f32 %v519_v33, %v518_v31 }
  0x5a   : > { %v539_v35 = vsel %vm538_vm13, %v520_v21, %v537_v34 }
  0x5b   : > { %541 = vst [vmem:[%s224_s23] sm:$0x7f] %v539_v35 }
  0x5c PF: > { %s12_s11 = sadd.s32 1, %s730_s11   ;;  %s814_s9 = smov %s726_s10 }
  0x5d   : > { %p9_p5 = scmp.ge.s32.totalorder %s12_s11, 4   ;;  %s815_s10 = smov %s817_s12 }
  0x5f   :  { %11 = sbr.rel (!%p9_p5) target bundleno = 2 (0x2), region = 121 }

</bundles_post_ra>
